<compile_context>
chip_gen: v5e
topology: v5e:2x2
jax: 0.10.0
libtpu: 0.0.40
codegen_flags: <defaults>
</compile_context>

<pallas_src>
import numpy as np
import jax
import jax.numpy as jnp
from jax import lax
from jax.experimental import pallas as pl
from jax.experimental.pallas import tpu as pltpu


def _round_up(x, m):
    return ((x + m - 1) // m) * m


def _tpu_generation():
    """Coarse TPU generation (5 / 6 / 7) used only for tile-size heuristics."""
    try:
        kind = jax.devices()[0].device_kind.lower()
    except Exception:
        return 6
    if "v7" in kind or "7x" in kind:
        return 7
    if "v6" in kind:
        return 6
    if "v5" in kind or "v4" in kind or "v3" in kind or "v2" in kind:
        return 5
    return 6


def generate_masks(key, N, s, p1, input_size):
    """Deterministic re-implementation of RISE.generate_masks (bilinear upsample + crop)."""
    H, W = input_size
    cell_h = int(np.ceil(H / s))
    cell_w = int(np.ceil(W / s))
    up_h, up_w = (s + 1) * cell_h, (s + 1) * cell_w
    kg, kx, ky = jax.random.split(key, 3)
    grid = (jax.random.uniform(kg, (N, s, s)) < p1).astype(jnp.float32)
    up = jax.image.resize(grid, (N, up_h, up_w), method="bilinear")
    xs = jax.random.randint(kx, (N,), 0, cell_h)
    ys = jax.random.randint(ky, (N,), 0, cell_w)
    crop = jax.vmap(lambda img, x0, y0: lax.dynamic_slice(img, (x0, y0), (H, W)))
    masks = crop(up, xs, ys)
    return masks.reshape(N, 1, H, W)


def rise_saliency(x, masks, w, b, p1, gpu_batch=None, compute_dtype=jnp.bfloat16):
    """RISE forward pass.

    x: (1,C,H,W) NCHW, masks: (N,1,H,W), w: (C,H*W,CL), b: (1,CL).
    Returns saliency of shape (CL, H, W).
    """
    _, C, H, W = x.shape
    N = masks.shape[0]
    HW = H * W
    CL = w.shape[-1]

    gen = _tpu_generation()

    # Lane-dense padding: last dims multiples of 128.
    HW_pad = _round_up(HW, 128)
    CL_pad = _round_up(CL, 128)
    CL_t = 256 if (gen >= 6 and CL_pad % 256 == 0) else 128
    CL_t = min(CL_t, CL_pad)

    # Generation-aware VMEM budget (v7x has only 64 MiB physical per TC).
    vmem_budget = (48 << 20) if gen >= 7 else (96 << 20)

    # Mask chunk size ("gpu_batch"): fill the MXU M/K dim per generation, then
    # shrink if the tile footprint would not fit the VMEM budget.
    nb = 128 if gen <= 5 else 256
    if gpu_batch is not None:
        nb = max(128, min(nb, _round_up(int(gpu_batch), 128)))

    def _tile_bytes(nb_):
        return (2 * nb_ * HW_pad * 2          # masks chunk, double-buffered, bf16
                + HW_pad * CL_t * 2           # wx tile, single-buffered, bf16
                + 2 * CL_t * HW_pad * 4       # sal output block, f32
                + 2 * CL_t * 4)               # bias

    while nb > 128 and _tile_bytes(nb) > 0.8 * vmem_budget:
        nb //= 2
    NB = nb
    N_pad = _round_up(max(N, NB), NB)

    x_flat = x.reshape(C, HW).astype(jnp.float32)
    masks_flat = masks.reshape(N, HW).astype(jnp.float32)

    # 1/(N*p1) folded into the model weights/bias (fuses into the einsum/cast,
    # deletes the per-step scale multiply inside the kernel).
    scale = 1.0 / (float(N) * float(p1))

    # Hoisted "model" weight contraction: wx[s, cl] = sum_c x[c, s] * w[c, s, cl].
    wx = jnp.einsum("cs,csl->sl", x_flat, w.astype(jnp.float32)) * scale     # (HW, CL)
    b_s = b.reshape(1, CL).astype(jnp.float32) * scale

    # Zero-pad to aligned shapes. Zero mask rows / zero HW columns / zero CL
    # columns contribute exactly zero to the saliency, so padding is free.
    masks_p = jnp.zeros((N_pad, HW_pad), compute_dtype).at[:N, :HW].set(
        masks_flat.astype(compute_dtype))
    wx_p = jnp.zeros((HW_pad, CL_pad), compute_dtype).at[:HW, :CL].set(
        wx.astype(compute_dtype))
    b_p = jnp.zeros((1, CL_pad), jnp.float32).at[:, :CL].set(b_s)

    n_cl_tiles = CL_pad // CL_t
    n_steps = N_pad // NB

    def kernel(masks_ref, wx_ref, b_ref, sal_ref):
        # Grid = (CL tile, mask chunk). The mask-chunk axis mirrors the
        # gpu_batch loop of the PyTorch forward; the saliency block is resident
        # across it and accumulated.
        @pl.when(pl.program_id(1) == 0)
        def _init():
            sal_ref[...] = jnp.zeros_like(sal_ref)

        m = masks_ref[...]                                            # (NB, HW) bf16
        # Synthetic linear "model": p = (m * x) . w + b == m @ wx + b (f32 acc).
        p = jnp.dot(m, wx_ref[...],
                    preferred_element_type=jnp.float32) + b_ref[...]  # (NB, CL_t)
        # sal += p^T @ m : contraction over the mask index. The large mask chunk
        # stays in MXU-native RHS orientation (K-dim first); only p is transposed.
        sal_ref[...] += lax.dot_general(
            p.astype(m.dtype), m, (((0,), (0,)), ((), ())),
            preferred_element_type=jnp.float32)

    flops = 4 * N_pad * HW_pad * CL_pad  # two matmuls per element of the grid sweep
    bytes_accessed = (n_cl_tiles * masks_p.size * masks_p.dtype.itemsize
                      + wx_p.size * wx_p.dtype.itemsize
                      + b_p.size * 4
                      + CL_pad * HW_pad * 4)

    vmem_limit = int(min(vmem_budget, max(32 << 20, int(1.5 * _tile_bytes(NB)))))

    sal_flat = pl.pallas_call(
        kernel,
        out_shape=jax.ShapeDtypeStruct((CL_pad, HW_pad), jnp.float32),
        grid_spec=pltpu.PrefetchScalarGridSpec(
            num_scalar_prefetch=0,
            grid=(n_cl_tiles, n_steps),
            in_specs=[
                # Mask chunk: changes every inner step -> default double-buffered.
                pl.BlockSpec((NB, HW_pad), lambda j, i: (i, 0)),
                # wx / bias only change at CL-tile boundaries -> single buffer
                # (saves the duplicate copy of the largest constant operand).
                pl.BlockSpec((HW_pad, CL_t), lambda j, i: (0, j),
                             pipeline_mode=pl.Buffered(1)),
                pl.BlockSpec((1, CL_t), lambda j, i: (0, j),
                             pipeline_mode=pl.Buffered(1)),
            ],
            out_specs=pl.BlockSpec((CL_t, HW_pad), lambda j, i: (j, 0)),
        ),
        compiler_params=pltpu.CompilerParams(
            # CL tiles are independent (shards across v7x's 2 TensorCores);
            # mask-chunk axis is the reduction.
            dimension_semantics=("parallel", "arbitrary"),
            vmem_limit_bytes=vmem_limit),
        cost_estimate=pl.CostEstimate(flops=flops, transcendentals=0,
                                      bytes_accessed=bytes_accessed),
    )(masks_p, wx_p, b_p)

    return sal_flat[:CL, :HW].reshape(CL, H, W)


if __name__ == "__main__":
    key = jax.random.PRNGKey(0)
    N, s, p1 = 512, 4, 0.5
    C, H, W, CL = 4, 16, 16, 16

    km, kx, kw, kb = jax.random.split(key, 4)
    masks = generate_masks(km, N, s, p1, (H, W))               # (N,1,H,W)
    x = jax.random.normal(kx, (1, C, H, W), jnp.float32)       # NCHW, batch=1
    w = jax.random.normal(kw, (C, H * W, CL), jnp.float32) * 0.02
    b = jax.random.normal(kb, (1, CL), jnp.float32) * 0.1

    sal = rise_saliency(x, masks, w, b, p1)
    jax.block_until_ready(sal)

    # --- references ---
    HW = H * W
    masks_flat = masks.reshape(N, HW)
    x_flat = x.reshape(C, HW)
    scale = 1.0 / (N * p1)

    # Strict reference: same bf16-input / f32-accumulate / scale-folded
    # arithmetic as the kernel.
    wx = jnp.einsum("cs,csl->sl", x_flat, w) * scale
    masks_bf = masks_flat.astype(jnp.bfloat16)
    wx_bf = wx.astype(jnp.bfloat16)
    p_ref = jnp.dot(masks_bf, wx_bf, preferred_element_type=jnp.float32) + b * scale
    sal_ref = lax.dot_general(
        p_ref.astype(jnp.bfloat16), masks_bf, (((0,), (0,)), ((), ())),
        preferred_element_type=jnp.float32).reshape(CL, H, W)

    # Loose reference: original full-precision RISE formula.
    p_full = jnp.einsum("ns,cs,csl->nl", masks_flat, x_flat, w) + b
    sal_full = (p_full.T @ masks_flat).reshape(CL, H, W) * scale

    assert sal.shape == (CL, H, W)
    assert jnp.allclose(sal, sal_ref, atol=2e-3, rtol=2e-3), "mismatch vs bf16 reference"
    assert jnp.allclose(sal, sal_full, atol=2e-2, rtol=2e-2), "mismatch vs f32 reference"
    print("KERNEL_OK")
</pallas_src>

<mosaic_0001>
module attributes {stable_mosaic.version = 11 : i64} {
  func.func @kernel(%arg0: i32, %arg1: i32, %arg2: memref<256x256xbf16, #tpu.memory_space<vmem>>, %arg3: memref<256x128xbf16, #tpu.memory_space<vmem>>, %arg4: memref<1x128xf32, #tpu.memory_space<vmem>>, %arg5: memref<128x256xf32, #tpu.memory_space<vmem>>) attributes {dimension_semantics = [#tpu.dimension_semantics<parallel>, #tpu.dimension_semantics<arbitrary>], iteration_bounds = array<i64: 1, 2>, scalar_prefetch = 0 : i64, scratch_operands = 0 : i64, tpu.core_type = #tpu.core_type<tc>, window_params = [{transform_indices = @transform_0, window_bounds = array<i64: 256, 256>}, {pipeline_mode = #tpu.pipeline_mode<synchronous>, transform_indices = @transform_1, window_bounds = array<i64: 256, 128>}, {pipeline_mode = #tpu.pipeline_mode<synchronous>, transform_indices = @transform_2, window_bounds = array<i64: 1, 128>}, {transform_indices = @transform_3, window_bounds = array<i64: 128, 256>}]} {
    %c0_i32 = arith.constant 0 : i32
    %0 = arith.cmpi eq, %arg1, %c0_i32 : i32
    %1 = arith.extui %0 : i1 to i32
    %c0_i32_0 = arith.constant 0 : i32
    %2 = arith.cmpi ne, %1, %c0_i32_0 : i32
    scf.if %2 {
      %cst_11 = arith.constant 0.000000e+00 : f32
      %14 = vector.broadcast %cst_11 : f32 to vector<128x256xf32>
      %c0_12 = arith.constant 0 : index
      %c0_13 = arith.constant 0 : index
      %15 = vector.load %arg5[%c0_12, %c0_13] : memref<128x256xf32, #tpu.memory_space<vmem>>, vector<128x256xf32>
      tpu.vector_store %arg5[%c0_12, %c0_13], %14 {strides = array<i32>} : memref<128x256xf32, #tpu.memory_space<vmem>>, vector<128x256xf32>,
    } else {
    }
    %c0 = arith.constant 0 : index
    %c0_1 = arith.constant 0 : index
    %3 = vector.load %arg2[%c0, %c0_1] : memref<256x256xbf16, #tpu.memory_space<vmem>>, vector<256x256xbf16>
    %c0_2 = arith.constant 0 : index
    %c0_3 = arith.constant 0 : index
    %4 = vector.load %arg3[%c0_2, %c0_3] : memref<256x128xbf16, #tpu.memory_space<vmem>>, vector<256x128xbf16>
    %cst = arith.constant dense<0.000000e+00> : vector<256x128xf32>
    %5 = tpu.matmul %3, %4, %cst {dimension_numbers = #tpu.dot_dimension_numbers<[1], [0], [0], [1], [0, 0, 1, 1], [], []>} : vector<256x256xbf16>, vector<256x128xbf16>, vector<256x128xf32> -> vector<256x128xf32>
    %c0_4 = arith.constant 0 : index
    %c0_5 = arith.constant 0 : index
    %6 = vector.load %arg4[%c0_4, %c0_5] : memref<1x128xf32, #tpu.memory_space<vmem>>, vector<1x128xf32>
    %7 = vector.broadcast %6 : vector<1x128xf32> to vector<256x128xf32>
    %8 = arith.addf %5, %7 : vector<256x128xf32>
    %c0_6 = arith.constant 0 : index
    %c0_7 = arith.constant 0 : index
    %9 = vector.load %arg5[%c0_6, %c0_7] : memref<128x256xf32, #tpu.memory_space<vmem>>, vector<128x256xf32>
    %10 = arith.truncf %8 : vector<256x128xf32> to vector<256x128xbf16>
    %cst_8 = arith.constant dense<0.000000e+00> : vector<128x256xf32>
    %11 = tpu.matmul %10, %3, %cst_8 {dimension_numbers = #tpu.dot_dimension_numbers<[0], [0], [1], [1], [0, 1, 1, 1], [], []>} : vector<256x128xbf16>, vector<256x256xbf16>, vector<128x256xf32> -> vector<128x256xf32>
    %12 = arith.addf %9, %11 : vector<128x256xf32>
    %c0_9 = arith.constant 0 : index
    %c0_10 = arith.constant 0 : index
    %13 = vector.load %arg5[%c0_9, %c0_10] : memref<128x256xf32, #tpu.memory_space<vmem>>, vector<128x256xf32>
    tpu.vector_store %arg5[%c0_9, %c0_10], %12 {strides = array<i32>} : memref<128x256xf32, #tpu.memory_space<vmem>>, vector<128x256xf32>,
    return
  }
  func.func @transform_0(%arg0: i32, %arg1: i32) -> (i32, i32) {
    %c0_i32 = arith.constant 0 : i32
    %c0_i32_0 = arith.constant 0 : i32
    return %arg1, %c0_i32 : i32, i32
  }
  func.func @transform_1(%arg0: i32, %arg1: i32) -> (i32, i32) {
    %c0_i32 = arith.constant 0 : i32
    %c0_i32_0 = arith.constant 0 : i32
    return %c0_i32, %arg0 : i32, i32
  }
  func.func @transform_2(%arg0: i32, %arg1: i32) -> (i32, i32) {
    %c0_i32 = arith.constant 0 : i32
    %c0_i32_0 = arith.constant 0 : i32
    return %c0_i32, %arg0 : i32, i32
  }
  func.func @transform_3(%arg0: i32, %arg1: i32) -> (i32, i32) {
    %c0_i32 = arith.constant 0 : i32
    %c0_i32_0 = arith.constant 0 : i32
    return %arg0, %c0_i32 : i32, i32
  }
}

</mosaic_0001>

<bundles_post_ra>
// kernel: tpu_custom_call.1
= control target key start
LH: loop header
LB: loop body
LE: loop exit
PB: predicated region body
PF: predicated region fallthrough
CT: control target
= control target key end

     0   :  { %8 = vsyncpa [#allocation3], 0  ;;  %s2133_s0 = inlined_call_operand.hbm [shape: bf16[512,256], index: 0, kind: input, shape index: {}]   ;;  %s2134_s1 = inlined_call_operand.hbm [shape: bf16[256,128], index: 1, kind: input, shape index: {}]   ;;  %s2135_s2 = inlined_call_operand.vmem [shape: f32[1,128], index: 2, kind: input, shape index: {}]   ;;  %s2136_s3 = inlined_call_operand.hbm [shape: f32[128,256], index: 3, kind: output, shape index: {}]  }
   0x1   :  { %10 = vsyncpa [#allocation3 + $0x1], 0 }
   0x2   :  { %11 = vsyncpa [#allocation6], 0 }
   0x3   :  { %12 = vsyncpa [#allocation4], 0  ;;  %s1762_s12 = smov 0   ;;  %s1764_s13 = smov 0  }
   0x4   :  { %s1766_s14 = smov 0   ;;  %s1768_s15 = smov 0  }
   0x5   :  { %s1770_s16 = smov 0   ;;  %s1772_s17 = smov 0  }
   0x6 LB: > { %s1215_s18 = sadd.s32 4294967295, %s1731_s17   ;;  %p50_p0 = scmp.ne.s32.totalorder %s1715_s13, %s1711_s12  ;;  %s1731_s17 = sphi %s1772_s17, %s18_s17   ;;  %s1727_s16 = sphi %s1770_s16, %s2145_s16   ;;  %s1723_s15 = sphi %s1768_s15, %s2144_s15   ;;  %s1719_s14 = sphi %s1766_s14, %s2143_s14   ;;  %s1715_s13 = sphi %s1764_s13, %s2142_s13   ;;  %s1711_s12 = sphi %s1762_s12, %s2141_s12  }
   0x7   : > { %p1794_p1 = scmp.eq.s32.totalorder %s1215_s18, 0  ;;  %p1216_p2 = scmp.ge.s32.totalorder %s1731_s17, 1 }
   0x8   : > { %p139_p3 = scmp.lt.s32.totalorder %s1731_s17, 3  ;;  %s152_s23 = sshll.u32 %s2134_s1, 4  ;;  %s153_s23 = int_to_ptr.hbm [resolvable:$true] %s152_s23 }
   0x9   : > { %p1802_p4 = por %p1794_p1, %p50_p0  ;;  %s1733_s25 = smov [#allocation5]  }
   0xa   : > { %p1809_p5 = pnand %p1216_p2, %p139_p3  ;;  %s154_s26 = sshll.u32 %s1733_s25, 4  ;;  %s155_s26 = int_to_ptr.vmem [resolvable:$true] %s154_s26 }
   0xb   : > { %s1734_s27 = smov 64   ;;  %s1735_s28 = smov 4  }
   0xc   : > { %p1490_p6 = pneg %p1809_p5  ;;  %s27_s29 = sadd.s32 1, %s1727_s16 }
   0xd   : > { %p28_p8 = scmp.ge.s32.totalorder %s27_s29, 2  ;;  %s37_s30 = sadd.s32 1, %s1719_s14 }
   0xe   : > { %p1491_p7 = pnand %p1490_p6, %p1794_p1  ;;  %p44_p9 = scmp.ne.s32.totalorder %s1719_s14, %s1715_s13 }
   0xf   : > { %p45_p10 = scmp.eq.s32.totalorder %s1731_s17, 0  ;;  %s2147_s29 = smov (%p28_p8, %s27_s29), 0 }
  0x10   : > { %1493 = dma.hbm_to_vmem [thread:$0]  (!%p1491_p7), %s153_s23, 2048, %s155_s26, [#allocation6], %s1734_s27, %s1734_s27, %s1735_s28  }
  0x11   : > { %p1824_p11 = por %p45_p10, %p44_p9  ;;  %p1499_p12 = scmp.lt.s32.totalorder %s1731_s17, 2 }
  0x12   : > { %s34_s5 = ssub.s32 %s1727_s16, %s2147_s29  ;;  %s174_s6 = sand.u32 1, %s1719_s14  }
  0x13   : > { %p35_p13 = scmp.eq.s32.totalorder %s34_s5, 0  ;;  %s1220_s7 = sshll.u32 %s174_s6, 8 }
  0x14   : > { %s1425_s8 = sshll.u32 %s1727_s16, 8  ;;  %s178_s22 = scalar_lea.vmem [#allocation2], %s1220_s7 }
  0x15   : > { %s1834_s9 = scalar_select %p35_p13, %s1719_s14, %s37_s30  }
  0x16   : > { %s184_s12 = scalar_lea.hbm %s2133_s0, %s1425_s8  ;;  %s187_s23 = sshll.u32 %s178_s22, 4  ;;  %s188_s23 = int_to_ptr.vmem [resolvable:$true] %s187_s23 }
  0x17   : > { %s185_s21 = sshll.u32 %s184_s12, 4  ;;  %p1495_p0 = pnand %p1499_p12, %p1824_p11  ;;  %s186_s21 = int_to_ptr.hbm [resolvable:$true] %s185_s21 }
  0x18   : > { %s175_s25 = scalar_lea.sflag [#allocation3], %s174_s6  ;;  %s1736_s26 = smov 128  }
  0x19   : > { %s1737_s27 = smov 8   ;;  %199 = sbr.rel (%p1809_p5) target bundleno = 942 (0x3ae), region = 32 }
  0x1a   : > { %1497 = dma.hbm_to_vmem [thread:$0]  (!%p1495_p0), %s186_s21, 4096, %s188_s23, %s175_s25, %s1736_s26, %s1736_s26, %s1737_s27  }
  0x1b   : > { %s201_s28 = sand.u32 (!%p1809_p5), 1, %s1715_s13  }
  0x1c   : > { %s1225_s30 = sshll.u32 (!%p1809_p5), %s201_s28, 8  ;;  %s202_s5 = scalar_lea.sflag (!%p1809_p5), [#allocation3], %s201_s28 }
  0x1d   : > { %s1846_s8 = scalar_lea.vmem (!%p1809_p5), [#allocation2], %s1225_s30 }
  0x1e   : > { %1698 = dma.done.wait (%p1802_p4), %s202_s5, 4096  }
  0x1f   : > { %1700 = vsyncadd (%p1802_p4), %s202_s5, 4294963200 }
  0x20   : > { %1702 = dma.done.wait (%p1794_p1), [#allocation6], 2048  }
  0x21   : > { %1704 = vsyncadd (%p1794_p1), [#allocation6], 4294965248  ;;  %p1227_p2 = scmp.ne.s32.totalorder %s1723_s15, 0 }
  0x23   : > { %240 = sbr.rel (%p1227_p2) target bundleno = 73 (0x49), region = 44 }
  0x28   : > { %v1738_v0 = vmov 0.0  }
  0x29   : > { %241 = vst [vmem:[#allocation7] sm:$0xff] %v1738_v0 }
  0x2a   : > { %242 = vst [vmem:[#allocation7 + $0x8] sm:$0xff] %v1738_v0 }
  0x2b   : > { %243 = vst [vmem:[#allocation7 + $0x10] sm:$0xff] %v1738_v0 }
  0x2c   : > { %244 = vst [vmem:[#allocation7 + $0x18] sm:$0xff] %v1738_v0 }
  0x2d   : > { %245 = vst [vmem:[#allocation7 + $0x20] sm:$0xff] %v1738_v0 }
  0x2e   : > { %246 = vst [vmem:[#allocation7 + $0x28] sm:$0xff] %v1738_v0 }
  0x2f   : > { %247 = vst [vmem:[#allocation7 + $0x30] sm:$0xff] %v1738_v0 }
  0x30   : > { %248 = vst [vmem:[#allocation7 + $0x38] sm:$0xff] %v1738_v0 }
  0x31   : > { %249 = vst [vmem:[#allocation7 + $0x40] sm:$0xff] %v1738_v0 }
  0x32   : > { %250 = vst [vmem:[#allocation7 + $0x48] sm:$0xff] %v1738_v0 }
  0x33   : > { %251 = vst [vmem:[#allocation7 + $0x50] sm:$0xff] %v1738_v0 }
  0x34   : > { %252 = vst [vmem:[#allocation7 + $0x58] sm:$0xff] %v1738_v0 }
  0x35   : > { %253 = vst [vmem:[#allocation7 + $0x60] sm:$0xff] %v1738_v0 }
  0x36   : > { %254 = vst [vmem:[#allocation7 + $0x68] sm:$0xff] %v1738_v0 }
  0x37   : > { %255 = vst [vmem:[#allocation7 + $0x70] sm:$0xff] %v1738_v0 }
  0x38   : > { %256 = vst [vmem:[#allocation7 + $0x78] sm:$0xff] %v1738_v0 }
  0x39   : > { %257 = vst [vmem:[#allocation7 + $0x80] sm:$0xff] %v1738_v0 }
  0x3a   : > { %258 = vst [vmem:[#allocation7 + $0x88] sm:$0xff] %v1738_v0 }
  0x3b   : > { %259 = vst [vmem:[#allocation7 + $0x90] sm:$0xff] %v1738_v0 }
  0x3c   : > { %260 = vst [vmem:[#allocation7 + $0x98] sm:$0xff] %v1738_v0 }
  0x3d   : > { %261 = vst [vmem:[#allocation7 + $0xa0] sm:$0xff] %v1738_v0 }
  0x3e   : > { %262 = vst [vmem:[#allocation7 + $0xa8] sm:$0xff] %v1738_v0 }
  0x3f   : > { %263 = vst [vmem:[#allocation7 + $0xb0] sm:$0xff] %v1738_v0 }
  0x40   : > { %264 = vst [vmem:[#allocation7 + $0xb8] sm:$0xff] %v1738_v0 }
  0x41   : > { %265 = vst [vmem:[#allocation7 + $0xc0] sm:$0xff] %v1738_v0 }
  0x42   : > { %266 = vst [vmem:[#allocation7 + $0xc8] sm:$0xff] %v1738_v0 }
  0x43   : > { %267 = vst [vmem:[#allocation7 + $0xd0] sm:$0xff] %v1738_v0 }
  0x44   : > { %268 = vst [vmem:[#allocation7 + $0xd8] sm:$0xff] %v1738_v0 }
  0x45   : > { %269 = vst [vmem:[#allocation7 + $0xe0] sm:$0xff] %v1738_v0 }
  0x46   : > { %270 = vst [vmem:[#allocation7 + $0xe8] sm:$0xff] %v1738_v0 }
  0x47   : > { %271 = vst [vmem:[#allocation7 + $0xf0] sm:$0xff] %v1738_v0 }
  0x48   : > { %272 = vst [vmem:[#allocation7 + $0xf8] sm:$0xff] %v1738_v0 }
  0x49 PF: > { %v1465_v1 = vld [vmem:[#allocation5 + $0x38] sm:$0xff]  ;;  %v1464_v3 = vld [vmem:[#allocation5 + $0x30] sm:$0xff]  ;;  %v1463_v5 = vld [vmem:[#allocation5 + $0x28] sm:$0xff]  ;;  %s1739_s20 = smov [#allocation7]   ;;  %s1126_s7 = sshll.u32 %s2136_s3, 4  ;;  %s1127_s7 = int_to_ptr.hbm [resolvable:$true] %s1126_s7 }
  0x4a   : > { %v1473_v2 = vld [vmem:[#allocation5 + $0x78] sm:$0xff]  ;;  %597 = vmatpush.bf16.msra.mxu0 %v1465_v1  ;;  %v1472_v4 = vld [vmem:[#allocation5 + $0x70] sm:$0xff]  ;;  %v1471_v6 = vld [vmem:[#allocation5 + $0x68] sm:$0xff]  ;;  %s1124_s24 = sshll.u32 %s1739_s20, 4  ;;  %p1501_p1 = scmp.eq.s32.totalorder %s1215_s18, 1  ;;  %s1125_s24 = int_to_ptr.vmem [resolvable:$true] %s1124_s24 }
  0x4b   : > { %686 = vmatpush.bf16.msra.mxu1 %v1473_v2  ;;  %v1462_v7 = vld [vmem:[#allocation5 + $0x20] sm:$0xff]  ;;  %v1461_v9 = vld [vmem:[#allocation5 + $0x18] sm:$0xff]  ;;  %v1460_v11 = vld [vmem:[#allocation5 + $0x10] sm:$0xff]  ;;  %s1740_s10 = smov 256   ;;  %s1741_s11 = smov 16  }
  0x4c   : > { %v1470_v8 = vld [vmem:[#allocation5 + $0x60] sm:$0xff]  ;;  %v1469_v10 = vld [vmem:[#allocation5 + $0x58] sm:$0xff]  ;;  %v1468_v12 = vld [vmem:[#allocation5 + $0x50] sm:$0xff] }
  0x4d   : > { %v1459_v13 = vld [vmem:[#allocation5 + $0x8] sm:$0xff]  ;;  %v1458_v15 = vld [vmem:[#allocation5] sm:$0xff]  ;;  %v1238_v23 = vld [vmem:[%s1846_s8 + $0x10] sm:$0xf] }
  0x4e   : > { %598 = vmatpush.bf16.msra.mxu0 %v1464_v3  ;;  %v1467_v14 = vld [vmem:[#allocation5 + $0x48] sm:$0xff]  ;;  %v1466_v16 = vld [vmem:[#allocation5 + $0x40] sm:$0xff]  ;;  %v1429_v24 = vld [vmem:[%s1846_s8 + $0x14] sm:$0xf0] }
  0x4f   : > { %687 = vmatpush.bf16.msra.mxu1 %v1472_v4  ;;  %v1230_v17 = vld [vmem:[%s1846_s8] sm:$0xf]  ;;  %v1427_v18 = vld [vmem:[%s1846_s8 + $0x4] sm:$0xf0]  ;;  %v1426_v19 = vld [vmem:[%s1846_s8 + $0x4] sm:$0xf]  ;;  %v1239_v27 = vor.u32 %v1429_v24, %v1238_v23 }
  0x50   : > { %v1232_v20 = vld [vmem:[%s1846_s8 + $0x8] sm:$0xf0]  ;;  %v1861_v21 = vor.u32 %v1427_v18, %v1230_v17  ;;  %v1428_v25 = vld [vmem:[%s1846_s8 + $0x14] sm:$0xf]  ;;  %v1240_v26 = vld [vmem:[%s1846_s8 + $0x18] sm:$0xf0] }
  0x51   : > { %v1863_v22 = vor.u32 %v1426_v19, %v1232_v20  ;;  %v1871_v28 = vor.u32 %v1428_v25, %v1240_v26  ;;  %v1246_v29 = vld [vmem:[%s1846_s8 + $0x20] sm:$0xf]  ;;  %v1431_v30 = vld [vmem:[%s1846_s8 + $0x24] sm:$0xf0]  ;;  %v1430_v31 = vld [vmem:[%s1846_s8 + $0x24] sm:$0xf] }
  0x52   : > { %599 = vmatpush.bf16.msra.mxu0 %v1463_v5  ;;  %v1248_v32 = vld [vmem:[%s1846_s8 + $0x28] sm:$0xf0]  ;;  %v1247_v33 = vor.u32 %v1431_v30, %v1246_v29  ;;  %v1254_v35 = vld [vmem:[%s1846_s8 + $0x30] sm:$0xf]  ;;  %v1433_v36 = vld [vmem:[%s1846_s8 + $0x34] sm:$0xf0] }
  0x53   : > { %688 = vmatpush.bf16.msra.mxu1 %v1471_v6  ;;  %v1251_v34 = vor.u32 %v1430_v31, %v1248_v32  ;;  %v1432_v37 = vld [vmem:[%s1846_s8 + $0x34] sm:$0xf]  ;;  %v1256_v38 = vld [vmem:[%s1846_s8 + $0x38] sm:$0xf0]  ;;  %v1255_v39 = vor.u32 %v1433_v36, %v1254_v35  ;;  %v1262_v41 = vld [vmem:[%s1846_s8 + $0x40] sm:$0xf] }
  0x54   : > { %v1259_v40 = vor.u32 %v1432_v37, %v1256_v38  ;;  %v1435_v42 = vld [vmem:[%s1846_s8 + $0x44] sm:$0xf0]  ;;  %v1434_v43 = vld [vmem:[%s1846_s8 + $0x44] sm:$0xf]  ;;  %v1264_v44 = vld [vmem:[%s1846_s8 + $0x48] sm:$0xf0] }
  0x55   : > { %v1263_v45 = vor.u32 %v1435_v42, %v1262_v41  ;;  %v1267_v46 = vor.u32 %v1434_v43, %v1264_v44  ;;  %v1286_v47 = vld [vmem:[%s1846_s8 + $0x70] sm:$0xf]  ;;  %v1441_v48 = vld [vmem:[%s1846_s8 + $0x74] sm:$0xf0]  ;;  %v1278_v50 = vld [vmem:[%s1846_s8 + $0x60] sm:$0xf] }
  0x56   : > { %600 = vmatpush.bf16.msra.mxu0 %v1462_v7  ;;  %v1287_v49 = vor.u32 %v1441_v48, %v1286_v47  ;;  %v1439_v51 = vld [vmem:[%s1846_s8 + $0x64] sm:$0xf0]  ;;  %v1270_v53 = vld [vmem:[%s1846_s8 + $0x50] sm:$0xf]  ;;  %v1437_v54 = vld [vmem:[%s1846_s8 + $0x54] sm:$0xf0] }
  0x57   : > { %689 = vmatpush.bf16.msra.mxu1 %v1470_v8  ;;  %v1279_v52 = vor.u32 %v1439_v51, %v1278_v50  ;;  %v1271_v55 = vor.u32 %v1437_v54, %v1270_v53  ;;  %v1436_v56 = vld [vmem:[%s1846_s8 + $0x54] sm:$0xf]  ;;  %v1272_v57 = vld [vmem:[%s1846_s8 + $0x58] sm:$0xf0]  ;;  %v1438_v59 = vld [vmem:[%s1846_s8 + $0x64] sm:$0xf] }
  0x58   : > { %855 = vmatpush.bf16.msra.mxu2 %v1287_v49  ;;  %v1275_v58 = vor.u32 %v1436_v56, %v1272_v57  ;;  %v1280_v60 = vld [vmem:[%s1846_s8 + $0x68] sm:$0xf0]  ;;  %v1440_v62 = vld [vmem:[%s1846_s8 + $0x74] sm:$0xf]  ;;  %v1288_v63 = vld [vmem:[%s1846_s8 + $0x78] sm:$0xf0] }
  0x59   : > { %v1283_v61 = vor.u32 %v1438_v59, %v1280_v60  ;;  %v1291_v0 = vor.u32 %v1440_v62, %v1288_v63  ;;  %v1294_v1 = vld [vmem:[%s1846_s8 + $0x80] sm:$0xf]  ;;  %v1443_v2 = vld [vmem:[%s1846_s8 + $0x84] sm:$0xf0]  ;;  %v1442_v3 = vld [vmem:[%s1846_s8 + $0x84] sm:$0xf] }
  0x5a   : > { %601 = vmatpush.bf16.msra.mxu0 %v1461_v9  ;;  %v1296_v4 = vld [vmem:[%s1846_s8 + $0x88] sm:$0xf0]  ;;  %v1907_v5 = vld [vmem:[%s2135_s2] ss:$0 sm:$0xff]  ;;  %v1909_v6 = vor.u32 %v1443_v2, %v1294_v1  ;;  %v1445_v17 = vld [vmem:[%s1846_s8 + $0x94] sm:$0xf0] }
  0x5b   : > { %690 = vmatpush.bf16.msra.mxu1 %v1469_v10  ;;  %v1911_v7 = vor.u32 %v1442_v3, %v1296_v4  ;;  %v1444_v18 = vld [vmem:[%s1846_s8 + $0x94] sm:$0xf]  ;;  %v1304_v19 = vld [vmem:[%s1846_s8 + $0x98] sm:$0xf0]  ;;  %v1310_v31 = vld [vmem:[%s1846_s8 + $0xa0] sm:$0xf] }
  0x5c   : > { %856 = vmatpush.bf16.msra.mxu2 %v1279_v52  ;;  %v1447_v32 = vld [vmem:[%s1846_s8 + $0xa4] sm:$0xf0]  ;;  %v1449_v47 = vld [vmem:[%s1846_s8 + $0xb4] sm:$0xf0]  ;;  %v1448_v48 = vld [vmem:[%s1846_s8 + $0xb4] sm:$0xf] }
  0x5d   : > { %v1946_v36 = vor.u32 %v1447_v32, %v1310_v31  ;;  %v1451_v62 = vld [vmem:[%s1846_s8 + $0xc4] sm:$0xf0]  ;;  %v1450_v63 = vld [vmem:[%s1846_s8 + $0xc4] sm:$0xf]  ;;  %v1350_v31 = vld [vmem:[%s1846_s8 + $0xf0] sm:$0xf] }
  0x5e   : > { %602 = vmatpush.bf16.msra.mxu0 %v1460_v11  ;;  %v1457_v32 = vld [vmem:[%s1846_s8 + $0xf4] sm:$0xf0] }
  0x5f   : > { %691 = vmatpush.bf16.msra.mxu1 %v1468_v12 }
  0x60   : > { %857 = vmatpush.bf16.msra.mxu2 %v1271_v55 }
  0x62   : > { %603 = vmatpush.bf16.msra.mxu0 %v1459_v13 }
  0x63   : > { %692 = vmatpush.bf16.msra.mxu1 %v1467_v14 }
  0x64   : > { %858 = vmatpush.bf16.msra.mxu2 %v1263_v45 }
  0x66   : > { %604 = vmatpush.bf16.msra.mxu0 %v1458_v15 }
  0x67   : > { %693 = vmatpush.bf16.msra.mxu1 %v1466_v16  ;;  %v1302_v16 = vld [vmem:[%s1846_s8 + $0x90] sm:$0xf] }
  0x68   : > { %859 = vmatpush.bf16.msra.mxu2 %v1255_v39 }
  0x69   : > { %605 = vmatmul.bf16.vlgmr.msra.gmra.mxu0 %v1861_v21 }
  0x6a   : > { %694 = vmatmul.bf16.vlgmr.msra.gmra.mxu1 %v1863_v22 }
  0x6c   : > { %860 = vmatpush.bf16.msra.mxu2 %v1247_v33 }
  0x70   : > { %861 = vmatpush.bf16.msra.mxu2 %v1239_v27 }
  0x74   : > { %862 = vmatpush.bf16.msra.mxu2 %v1861_v21  ;;  %v1928_v21 = vor.u32 %v1445_v17, %v1302_v16  ;;  %v1334_v17 = vld [vmem:[%s1846_s8 + $0xd0] sm:$0xf] }
  0x78   : > { %953 = vmatpush.bf16.msrb.mxu2 %v1291_v0 }
  0x79   : > { %610 = vmatmul.bf16.gmra.mxu0 %v1239_v27 }
  0x7a   : > { %699 = vmatmul.bf16.gmra.mxu1 %v1871_v28 }
  0x7c   : > { %954 = vmatpush.bf16.msrb.mxu2 %v1283_v61 }
  0x80   : > { %955 = vmatpush.bf16.msrb.mxu2 %v1275_v58 }
  0x84   : > { %956 = vmatpush.bf16.msrb.mxu2 %v1267_v46 }
  0x88   : > { %957 = vmatpush.bf16.msrb.mxu2 %v1259_v40 }
  0x89   : > { %615 = vmatmul.bf16.gmra.mxu0 %v1247_v33  ;;  %v1446_v33 = vld [vmem:[%s1846_s8 + $0xa4] sm:$0xf] }
  0x8a   : > { %704 = vmatmul.bf16.gmra.mxu1 %v1251_v34 }
  0x8c   : > { %958 = vmatpush.bf16.msrb.mxu2 %v1251_v34  ;;  %v1312_v34 = vld [vmem:[%s1846_s8 + $0xa8] sm:$0xf0] }
  0x8d   : > { %v1948_v37 = vor.u32 %v1446_v33, %v1312_v34  ;;  %v1351_v34 = vor.u32 %v1457_v32, %v1350_v31 }
  0x8f   : > { %904 = vmatpush.bf16.msra.mxu3 %v1351_v34 }
  0x90   : > { %959 = vmatpush.bf16.msrb.mxu2 %v1871_v28 }
  0x94   : > { %960 = vmatpush.bf16.msrb.mxu2 %v1863_v22  ;;  %v1930_v22 = vor.u32 %v1444_v18, %v1304_v19  ;;  %v1453_v18 = vld [vmem:[%s1846_s8 + $0xd4] sm:$0xf0]  ;;  %v1452_v19 = vld [vmem:[%s1846_s8 + $0xd4] sm:$0xf] }
  0x99   : > { %620 = vmatmul.bf16.gmra.mxu0 %v1255_v39 }
  0x9a   : > { %709 = vmatmul.bf16.gmra.mxu1 %v1259_v40 }
  0xa9   : > { %625 = vmatmul.bf16.gmra.mxu0 %v1263_v45 }
  0xaa   : > { %714 = vmatmul.bf16.gmra.mxu1 %v1267_v46  ;;  %v1318_v46 = vld [vmem:[%s1846_s8 + $0xb0] sm:$0xf] }
  0xab   : > { %v1964_v51 = vor.u32 %v1449_v47, %v1318_v46 }
  0xb9   : > { %630 = vmatmul.bf16.gmra.mxu0 %v1271_v55 }
  0xba   : > { %719 = vmatmul.bf16.gmra.mxu1 %v1275_v58 }
  0xc9   : > { %635 = vmatmul.bf16.gmra.mxu0 %v1279_v52 }
  0xca   : > { %724 = vmatmul.bf16.gmra.mxu1 %v1283_v61  ;;  %v1326_v61 = vld [vmem:[%s1846_s8 + $0xc0] sm:$0xf] }
  0xcb   : > { %v1327_v2 = vor.u32 %v1451_v62, %v1326_v61 }
  0xd9   : > { %640 = vmatmul.bf16.gmra.mxu0 %v1287_v49  ;;  %v1320_v49 = vld [vmem:[%s1846_s8 + $0xb8] sm:$0xf0] }
  0xda   : > { %729 = vmatmul.bf16.gmra.mxu1 %v1291_v0  ;;  %v1966_v52 = vor.u32 %v1448_v48, %v1320_v49  ;;  %v1328_v0 = vld [vmem:[%s1846_s8 + $0xc8] sm:$0xf0]  ;;  %v1454_v48 = vld [vmem:[%s1846_s8 + $0xe4] sm:$0xf] }
  0xdb   : > { %v1982_v3 = vor.u32 %v1450_v63, %v1328_v0  ;;  %v1344_v49 = vld [vmem:[%s1846_s8 + $0xe8] sm:$0xf0] }
  0xe6   : > { %v606_v8 = vpop.f32.mrf.mxu0 }
  0xe7   : > { %v695_v9 = vpop.f32.mrf.mxu1  ;;  %v607_v10 = vadd.f32 %v1907_v5, %v606_v8 }
  0xe9   : > { %v1915_v11 = vadd.f32 %v695_v9, %v607_v10  ;;  %645 = vmatmul.bf16.gmra.mxu0 %v1909_v6 }
  0xea   : > { %734 = vmatmul.bf16.gmra.mxu1 %v1911_v7 }
  0xee   : > { %v608_v12 = vpop.f32.mrf.mxu0 }
  0xef   : > { %v697_v13 = vpop.f32.mrf.mxu1  ;;  %v609_v14 = vadd.f32 %v1907_v5, %v608_v12 }
  0xf1   : > { %v1920_v15 = vadd.f32 %v697_v13, %v609_v14 }
  0xf3   : > { %v807_v20 = vpack.c.bf16 %v1920_v15, %v1915_v11 }
  0xf6   : > { %v611_v23 = vpop.f32.mrf.mxu0 }
  0xf7   : > { %v700_v24 = vpop.f32.mrf.mxu1  ;;  %v612_v25 = vadd.f32 %v1907_v5, %v611_v23  ;;  %v1336_v23 = vld [vmem:[%s1846_s8 + $0xd8] sm:$0xf0] }
  0xf9   : > { %v1933_v26 = vadd.f32 %v700_v24, %v612_v25  ;;  %650 = vmatmul.bf16.gmra.mxu0 %v1928_v21  ;;  %v1335_v25 = vor.u32 %v1453_v18, %v1334_v17 }
  0xfa   : > { %739 = vmatmul.bf16.gmra.mxu1 %v1930_v22 }
  0xfe   : > { %v613_v27 = vpop.f32.mrf.mxu0 }
  0xff   : > { %v702_v28 = vpop.f32.mrf.mxu1  ;;  %v614_v29 = vadd.f32 %v1907_v5, %v613_v27  ;;  %v1339_v27 = vor.u32 %v1452_v19, %v1336_v23 }
 0x101   : > { %v1938_v30 = vadd.f32 %v702_v28, %v614_v29 }
 0x103   : > { %v808_v35 = vpack.c.bf16 %v1938_v30, %v1933_v26 }
 0x106   : > { %v616_v38 = vpop.f32.mrf.mxu0 }
 0x107   : > { %v705_v39 = vpop.f32.mrf.mxu1  ;;  %v617_v40 = vadd.f32 %v1907_v5, %v616_v38 }
 0x109   : > { %v1951_v41 = vadd.f32 %v705_v39, %v617_v40  ;;  %655 = vmatmul.bf16.gmra.mxu0 %v1946_v36  ;;  %v1342_v39 = vld [vmem:[%s1846_s8 + $0xe0] sm:$0xf]  ;;  %v1455_v40 = vld [vmem:[%s1846_s8 + $0xe4] sm:$0xf0] }
 0x10a   : > { %744 = vmatmul.bf16.gmra.mxu1 %v1948_v37 }
 0x10e   : > { %v618_v42 = vpop.f32.mrf.mxu0 }
 0x10f   : > { %v707_v43 = vpop.f32.mrf.mxu1  ;;  %v619_v44 = vadd.f32 %v1907_v5, %v618_v42  ;;  %v1343_v42 = vor.u32 %v1455_v40, %v1342_v39 }
 0x111   : > { %v1956_v45 = vadd.f32 %v707_v43, %v619_v44  ;;  %905 = vmatpush.bf16.msra.mxu3 %v1343_v42 }
 0x113   : > { %v809_v50 = vpack.c.bf16 %v1956_v45, %v1951_v41 }
 0x115   : > { %906 = vmatpush.bf16.msra.mxu3 %v1335_v25 }
 0x116   : > { %v621_v53 = vpop.f32.mrf.mxu0 }
 0x117   : > { %v710_v54 = vpop.f32.mrf.mxu1  ;;  %v622_v55 = vadd.f32 %v1907_v5, %v621_v53 }
 0x119   : > { %v1969_v56 = vadd.f32 %v710_v54, %v622_v55  ;;  %660 = vmatmul.bf16.gmra.mxu0 %v1964_v51  ;;  %v1347_v54 = vor.u32 %v1454_v48, %v1344_v49  ;;  %907 = vmatpush.bf16.msra.mxu3 %v1327_v2 }
 0x11a   : > { %749 = vmatmul.bf16.gmra.mxu1 %v1966_v52 }
 0x11d   : > { %908 = vmatpush.bf16.msra.mxu3 %v1964_v51 }
 0x11e   : > { %v623_v57 = vpop.f32.mrf.mxu0 }
 0x11f   : > { %v712_v58 = vpop.f32.mrf.mxu1  ;;  %v624_v59 = vadd.f32 %v1907_v5, %v623_v57 }
 0x121   : > { %v1974_v60 = vadd.f32 %v712_v58, %v624_v59  ;;  %909 = vmatpush.bf16.msra.mxu3 %v1946_v36 }
 0x123   : > { %v810_v1 = vpack.c.bf16 %v1974_v60, %v1969_v56 }
 0x125   : > { %910 = vmatpush.bf16.msra.mxu3 %v1928_v21 }
 0x126   : > { %v626_v4 = vpop.f32.mrf.mxu0 }
 0x127   : > { %v715_v8 = vpop.f32.mrf.mxu1  ;;  %v627_v9 = vadd.f32 %v1907_v5, %v626_v4  ;;  %v1456_v4 = vld [vmem:[%s1846_s8 + $0xf4] sm:$0xf] }
 0x129   : > { %v1985_v10 = vadd.f32 %v715_v8, %v627_v9  ;;  %665 = vmatmul.bf16.gmra.mxu0 %v1327_v2  ;;  %v1352_v8 = vld [vmem:[%s1846_s8 + $0xf8] sm:$0xf0]  ;;  %911 = vmatpush.bf16.msra.mxu3 %v1909_v6 }
 0x12a   : > { %754 = vmatmul.bf16.gmra.mxu1 %v1982_v3  ;;  %v1355_v9 = vor.u32 %v1456_v4, %v1352_v8 }
 0x12d   : > { %1002 = vmatpush.bf16.msrb.mxu3 %v1355_v9 }
 0x12e   : > { %v628_v12 = vpop.f32.mrf.mxu0 }
 0x12f   : > { %v717_v13 = vpop.f32.mrf.mxu1  ;;  %v629_v14 = vadd.f32 %v1907_v5, %v628_v12 }
 0x131   : > { %v1989_v16 = vadd.f32 %v717_v13, %v629_v14  ;;  %1003 = vmatpush.bf16.msrb.mxu3 %v1347_v54 }
 0x133   : > { %v811_v24 = vpack.c.bf16 %v1989_v16, %v1985_v10 }
 0x135   : > { %1004 = vmatpush.bf16.msrb.mxu3 %v1339_v27 }
 0x136   : > { %v631_v28 = vpop.f32.mrf.mxu0 }
 0x137   : > { %v720_v29 = vpop.f32.mrf.mxu1  ;;  %v632_v33 = vadd.f32 %v1907_v5, %v631_v28 }
 0x139   : > { %v2000_v38 = vadd.f32 %v720_v29, %v632_v33  ;;  %670 = vmatmul.bf16.gmra.mxu0 %v1335_v25  ;;  %1005 = vmatpush.bf16.msrb.mxu3 %v1982_v3 }
 0x13a   : > { %759 = vmatmul.bf16.gmra.mxu1 %v1339_v27 }
 0x13d   : > { %1006 = vmatpush.bf16.msrb.mxu3 %v1966_v52 }
 0x13e   : > { %v633_v43 = vpop.f32.mrf.mxu0 }
 0x13f   : > { %v722_v44 = vpop.f32.mrf.mxu1  ;;  %v634_v46 = vadd.f32 %v1907_v5, %v633_v43 }
 0x141   : > { %v2005_v47 = vadd.f32 %v722_v44, %v634_v46  ;;  %1007 = vmatpush.bf16.msrb.mxu3 %v1948_v37 }
 0x143   : > { %v812_v53 = vpack.c.bf16 %v2005_v47, %v2000_v38 }
 0x145   : > { %1008 = vmatpush.bf16.msrb.mxu3 %v1930_v22 }
 0x146   : > { %v636_v55 = vpop.f32.mrf.mxu0 }
 0x147   : > { %v725_v57 = vpop.f32.mrf.mxu1  ;;  %v637_v58 = vadd.f32 %v1907_v5, %v636_v55 }
 0x149   : > { %v2012_v59 = vadd.f32 %v725_v57, %v637_v58  ;;  %675 = vmatmul.bf16.gmra.mxu0 %v1343_v42  ;;  %1009 = vmatpush.bf16.msrb.mxu3 %v1911_v7 }
 0x14a   : > { %764 = vmatmul.bf16.gmra.mxu1 %v1347_v54 }
 0x14e   : > { %v638_v61 = vpop.f32.mrf.mxu0 }
 0x14f   : > { %v727_v62 = vpop.f32.mrf.mxu1  ;;  %v639_v63 = vadd.f32 %v1907_v5, %v638_v61 }
 0x151   : > { %v2017_v0 = vadd.f32 %v727_v62, %v639_v63 }
 0x153   : > { %v813_v2 = vpack.c.bf16 %v2017_v0, %v2012_v59 }
 0x156   : > { %v641_v12 = vpop.f32.mrf.mxu0 }
 0x157   : > { %v730_v13 = vpop.f32.mrf.mxu1  ;;  %v642_v51 = vadd.f32 %v1907_v5, %v641_v12 }
 0x159   : > { %v2026_v36 = vadd.f32 %v730_v13, %v642_v51  ;;  %680 = vmatmul.bf16.gmra.mxu0 %v1351_v34 }
 0x15a   : > { %769 = vmatmul.bf16.gmra.mxu1 %v1355_v9 }
 0x15e   : > { %v643_v14 = vpop.f32.mrf.mxu0 }
 0x15f   : > { %v732_v17 = vpop.f32.mrf.mxu1  ;;  %v644_v21 = vadd.f32 %v1907_v5, %v643_v14 }
 0x161   : > { %v2029_v18 = vadd.f32 %v732_v17, %v644_v21 }
 0x163   : > { %v814_v19 = vpack.c.bf16 %v2029_v18, %v2026_v36 }
 0x166   : > { %v646_v6 = vpop.f32.mrf.mxu0 }
 0x167   : > { %v735_v23 = vpop.f32.mrf.mxu1  ;;  %v647_v25 = vadd.f32 %v1907_v5, %v646_v6 }
 0x169   : > { %v736_v27 = vadd.f32 %v735_v23, %v647_v25 }
 0x16e   : > { %v648_v28 = vpop.f32.mrf.mxu0 }
 0x16f   : > { %v737_v29 = vpop.f32.mrf.mxu1  ;;  %v649_v31 = vadd.f32 %v1907_v5, %v648_v28 }
 0x171   : > { %v738_v32 = vadd.f32 %v737_v29, %v649_v31 }
 0x173   : > { %v815_v33 = vpack.c.bf16 %v738_v32, %v736_v27 }
 0x175   : > { %1560 = vxpose.binary.xlu0.c.b16.start [1/16] %v815_v33, %v807_v20, 128 }
 0x176   : > { %v651_v52 = vpop.f32.mrf.mxu0 }
 0x177   : > { %v740_v3 = vpop.f32.mrf.mxu1  ;;  %v652_v37 = vadd.f32 %v1907_v5, %v651_v52 }
 0x179   : > { %v741_v42 = vadd.f32 %v740_v3, %v652_v37 }
 0x17e   : > { %v653_v34 = vpop.f32.mrf.mxu0 }
 0x17f   : > { %v742_v39 = vpop.f32.mrf.mxu1  ;;  %v654_v40 = vadd.f32 %v1907_v5, %v653_v34 }
 0x181   : > { %v743_v43 = vadd.f32 %v742_v39, %v654_v40 }
 0x183   : > { %v816_v22 = vpack.c.bf16 %v743_v43, %v741_v42 }
 0x185   : > { %1561 = vxpose.binary.xlu0.c.b16.cont [2/16] %v816_v22, %v808_v35, 128 }
 0x186   : > { %v656_v7 = vpop.f32.mrf.mxu0 }
 0x187   : > { %v745_v44 = vpop.f32.mrf.mxu1  ;;  %v657_v11 = vadd.f32 %v1907_v5, %v656_v7 }
 0x189   : > { %v746_v48 = vadd.f32 %v745_v44, %v657_v11 }
 0x18e   : > { %v658_v15 = vpop.f32.mrf.mxu0 }
 0x18f   : > { %v747_v20 = vpop.f32.mrf.mxu1  ;;  %v659_v46 = vadd.f32 %v1907_v5, %v658_v15 }
 0x191   : > { %v748_v49 = vadd.f32 %v747_v20, %v659_v46 }
 0x193   : > { %v817_v54 = vpack.c.bf16 %v748_v49, %v746_v48 }
 0x195   : > { %1562 = vxpose.binary.xlu0.c.b16.cont [3/16] %v817_v54, %v809_v50, 128  ;;  %v775_v54 = vld [vmem:[#allocation7] sm:$0xff] }
 0x196   : > { %v661_v55 = vpop.f32.mrf.mxu0 }
 0x197   : > { %v750_v57 = vpop.f32.mrf.mxu1  ;;  %v662_v26 = vadd.f32 %v1907_v5, %v661_v55 }
 0x199   : > { %v751_v61 = vadd.f32 %v750_v57, %v662_v26 }
 0x19e   : > { %v663_v30 = vpop.f32.mrf.mxu0 }
 0x19f   : > { %v752_v35 = vpop.f32.mrf.mxu1  ;;  %v664_v58 = vadd.f32 %v1907_v5, %v663_v30 }
 0x1a1   : > { %v753_v62 = vadd.f32 %v752_v35, %v664_v58  ;;  %v777_v35 = vld [vmem:[#allocation7 + $0x10] sm:$0xff] }
 0x1a3   : > { %v818_v63 = vpack.c.bf16 %v753_v62, %v751_v61 }
 0x1a5   : > { %1563 = vxpose.binary.xlu0.c.b16.cont [4/16] %v818_v63, %v810_v1, 128 }
 0x1a6   : > { %v666_v4 = vpop.f32.mrf.mxu0 }
 0x1a7   : > { %v755_v8 = vpop.f32.mrf.mxu1  ;;  %v667_v41 = vadd.f32 %v1907_v5, %v666_v4  ;;  %v779_v4 = vld [vmem:[#allocation7 + $0x20] sm:$0xff] }
 0x1a9   : > { %v756_v12 = vadd.f32 %v755_v8, %v667_v41 }
 0x1ae   : > { %v668_v45 = vpop.f32.mrf.mxu0 }
 0x1af   : > { %v757_v50 = vpop.f32.mrf.mxu1  ;;  %v669_v9 = vadd.f32 %v1907_v5, %v668_v45 }
 0x1b1   : > { %v758_v13 = vadd.f32 %v757_v50, %v669_v9  ;;  %v781_v9 = vld [vmem:[#allocation7 + $0x30] sm:$0xff] }
 0x1b3   : > { %v819_v51 = vpack.c.bf16 %v758_v13, %v756_v12 }
 0x1b5   : > { %1564 = vxpose.binary.xlu0.c.b16.cont [5/16] %v819_v51, %v811_v24, 128 }
 0x1b6   : > { %v671_v14 = vpop.f32.mrf.mxu0 }
 0x1b7   : > { %v760_v17 = vpop.f32.mrf.mxu1  ;;  %v672_v56 = vadd.f32 %v1907_v5, %v671_v14 }
 0x1b9   : > { %v761_v6 = vadd.f32 %v760_v17, %v672_v56  ;;  %v783_v17 = vld [vmem:[#allocation7 + $0x40] sm:$0xff] }
 0x1be   : > { %v673_v60 = vpop.f32.mrf.mxu0 }
 0x1bf   : > { %v762_v1 = vpop.f32.mrf.mxu1  ;;  %v674_v21 = vadd.f32 %v1907_v5, %v673_v60 }
 0x1c1   : > { %v763_v23 = vadd.f32 %v762_v1, %v674_v21 }
 0x1c3   : > { %v820_v25 = vpack.c.bf16 %v763_v23, %v761_v6  ;;  %v785_v6 = vld [vmem:[#allocation7 + $0x50] sm:$0xff] }
 0x1c5   : > { %1565 = vxpose.binary.xlu0.c.b16.cont [6/16] %v820_v25, %v812_v53, 128 }
 0x1c6   : > { %v676_v28 = vpop.f32.mrf.mxu0 }
 0x1c7   : > { %v765_v29 = vpop.f32.mrf.mxu1  ;;  %v677_v10 = vadd.f32 %v1907_v5, %v676_v28 }
 0x1c9   : > { %v766_v27 = vadd.f32 %v765_v29, %v677_v10  ;;  %v787_v10 = vld [vmem:[#allocation7 + $0x60] sm:$0xff] }
 0x1ce   : > { %v678_v16 = vpop.f32.mrf.mxu0 }
 0x1cf   : > { %v767_v24 = vpop.f32.mrf.mxu1  ;;  %v679_v31 = vadd.f32 %v1907_v5, %v678_v16 }
 0x1d1   : > { %v768_v32 = vadd.f32 %v767_v24, %v679_v31 }
 0x1d3   : > { %v821_v33 = vpack.c.bf16 %v768_v32, %v766_v27  ;;  %v789_v32 = vld [vmem:[#allocation7 + $0x70] sm:$0xff] }
 0x1d5   : > { %1566 = vxpose.binary.xlu0.c.b16.cont [7/16] %v821_v33, %v813_v2, 128 }
 0x1d6   : > { %v681_v52 = vpop.f32.mrf.mxu0 }
 0x1d7   : > { %v770_v3 = vpop.f32.mrf.mxu1  ;;  %v682_v38 = vadd.f32 %v1907_v5, %v681_v52 }
 0x1d9   : > { %v771_v34 = vadd.f32 %v770_v3, %v682_v38 }
 0x1de   : > { %v683_v47 = vpop.f32.mrf.mxu0 }
 0x1df   : > { %v684_v53 = vadd.f32 %v1907_v5, %v683_v47  ;;  %v772_v37 = vpop.f32.mrf.mxu1  ;;  %v791_v47 = vld [vmem:[#allocation7 + $0x80] sm:$0xff] }
 0x1e1   : > { %v773_v39 = vadd.f32 %v772_v37, %v684_v53 }
 0x1e3   : > { %v822_v40 = vpack.c.bf16 %v773_v39, %v771_v34 }
 0x1e5   : > { %1567 = vxpose.binary.xlu0.c.b16.end [8/16] %v822_v40, %v814_v19, 128  ;;  %v793_v40 = vld [vmem:[#allocation7 + $0x90] sm:$0xff] }
 0x221   : > { %v1568_v42 = vpop.trf.xlu0 }
 0x222   : > { %863 = vmatmul.bf16.vlgmr.msra.gmra.mxu2 %v1568_v42 }
 0x229   : > { %v1569_v43 = vpop.trf.xlu0 }
 0x22a   : > { %912 = vmatmul.bf16.vlgmr.msra.gmra.mxu3 %v1569_v43 }
 0x231   : > { %v1570_v59 = vpop.trf.xlu0 }
 0x232   : > { %868 = vmatmul.bf16.gmra.mxu2 %v1570_v59 }
 0x239   : > { %v1571_v0 = vpop.trf.xlu0 }
 0x23a   : > { %917 = vmatmul.bf16.gmra.mxu3 %v1571_v0 }
 0x241   : > { %v1572_v2 = vpop.trf.xlu0 }
 0x242   : > { %873 = vmatmul.bf16.gmra.mxu2 %v1572_v2 }
 0x249   : > { %v1573_v22 = vpop.trf.xlu0 }
 0x24a   : > { %922 = vmatmul.bf16.gmra.mxu3 %v1573_v22 }
 0x251   : > { %v1574_v5 = vpop.trf.xlu0 }
 0x252   : > { %878 = vmatmul.bf16.gmra.mxu2 %v1574_v5 }
 0x259   : > { %v1575_v7 = vpop.trf.xlu0 }
 0x25a   : > { %927 = vmatmul.bf16.gmra.mxu3 %v1575_v7 }
 0x261   : > { %v2078_v44 = vpop.trf.xlu0 }
 0x262   : > { %883 = vmatmul.bf16.gmra.mxu2 %v2078_v44 }
 0x269   : > { %v2081_v36 = vpop.trf.xlu0 }
 0x26a   : > { %932 = vmatmul.bf16.gmra.mxu3 %v2081_v36 }
 0x271   : > { %v2084_v18 = vpop.trf.xlu0 }
 0x272   : > { %888 = vmatmul.bf16.gmra.mxu2 %v2084_v18 }
 0x279   : > { %v2087_v19 = vpop.trf.xlu0 }
 0x27a   : > { %937 = vmatmul.bf16.gmra.mxu3 %v2087_v19 }
 0x281   : > { %v2090_v11 = vpop.trf.xlu0 }
 0x282   : > { %893 = vmatmul.bf16.gmra.mxu2 %v2090_v11 }
 0x289   : > { %v2093_v15 = vpop.trf.xlu0 }
 0x28a   : > { %942 = vmatmul.bf16.gmra.mxu3 %v2093_v15 }
 0x291   : > { %v2096_v20 = vpop.trf.xlu0 }
 0x292   : > { %898 = vmatmul.bf16.gmra.mxu2 %v2096_v20 }
 0x299   : > { %v2099_v46 = vpop.trf.xlu0 }
 0x29a   : > { %947 = vmatmul.bf16.gmra.mxu3 %v2099_v46 }
 0x2a2   : > { %961 = vmatmul.bf16.vlgmr.msrb.gmra.mxu2 %v1568_v42 }
 0x2a5   : > { %v864_v48 = vpop.f32.mrf.mxu2 }
 0x2aa   : > { %1010 = vmatmul.bf16.vlgmr.msrb.gmra.mxu3 %v1569_v43 }
 0x2ad   : > { %v866_v49 = vpop.f32.mrf.mxu2  ;;  %v913_v55 = vpop.f32.mrf.mxu3 }
 0x2ae   : > { %v914_v57 = vadd.f32 %v913_v55, %v864_v48  ;;  %v799_v55 = vld [vmem:[#allocation7 + $0xc0] sm:$0xff] }
 0x2b0   : > { %v1051_v26 = vadd.f32 %v914_v57, %v775_v54 }
 0x2b2   : > { %1083 = vst [vmem:[#allocation7] sm:$0xff] %v1051_v26  ;;  %966 = vmatmul.bf16.gmra.mxu2 %v1570_v59 }
 0x2b5   : > { %v869_v30 = vpop.f32.mrf.mxu2  ;;  %v915_v58 = vpop.f32.mrf.mxu3 }
 0x2b6   : > { %v916_v61 = vadd.f32 %v915_v58, %v866_v49 }
 0x2b8   : > { %v1053_v62 = vadd.f32 %v916_v61, %v777_v35  ;;  %v801_v35 = vld [vmem:[#allocation7 + $0xd0] sm:$0xff] }
 0x2ba   : > { %1085 = vst [vmem:[#allocation7 + $0x10] sm:$0xff] %v1053_v62  ;;  %1015 = vmatmul.bf16.gmra.mxu3 %v1571_v0 }
 0x2bd   : > { %v871_v63 = vpop.f32.mrf.mxu2  ;;  %v918_v8 = vpop.f32.mrf.mxu3 }
 0x2be   : > { %v919_v41 = vadd.f32 %v918_v8, %v869_v30 }
 0x2c0   : > { %v1055_v45 = vadd.f32 %v919_v41, %v779_v4  ;;  %v805_v41 = vld [vmem:[#allocation7 + $0xf0] sm:$0xff] }
 0x2c2   : > { %1087 = vst [vmem:[#allocation7 + $0x20] sm:$0xff] %v1055_v45  ;;  %971 = vmatmul.bf16.gmra.mxu2 %v1572_v2  ;;  %v795_v2 = vld [vmem:[#allocation7 + $0xa0] sm:$0xff] }
 0x2c5   : > { %v874_v50 = vpop.f32.mrf.mxu2  ;;  %v920_v12 = vpop.f32.mrf.mxu3 }
 0x2c6   : > { %v921_v13 = vadd.f32 %v920_v12, %v871_v63  ;;  %v803_v63 = vld [vmem:[#allocation7 + $0xe0] sm:$0xff] }
 0x2c8   : > { %v1057_v51 = vadd.f32 %v921_v13, %v781_v9  ;;  %v776_v13 = vld [vmem:[#allocation7 + $0x8] sm:$0xff] }
 0x2ca   : > { %1089 = vst [vmem:[#allocation7 + $0x30] sm:$0xff] %v1057_v51  ;;  %1020 = vmatmul.bf16.gmra.mxu3 %v1573_v22 }
 0x2cd   : > { %v876_v14 = vpop.f32.mrf.mxu2  ;;  %v923_v56 = vpop.f32.mrf.mxu3 }
 0x2ce   : > { %v924_v60 = vadd.f32 %v923_v56, %v874_v50 }
 0x2d0   : > { %v1059_v1 = vadd.f32 %v924_v60, %v783_v17 }
 0x2d2   : > { %1091 = vst [vmem:[#allocation7 + $0x40] sm:$0xff] %v1059_v1  ;;  %976 = vmatmul.bf16.gmra.mxu2 %v1574_v5 }
 0x2d5   : > { %v879_v21 = vpop.f32.mrf.mxu2  ;;  %v925_v23 = vpop.f32.mrf.mxu3 }
 0x2d6   : > { %v926_v25 = vadd.f32 %v925_v23, %v876_v14  ;;  %v780_v23 = vld [vmem:[#allocation7 + $0x28] sm:$0xff] }
 0x2d8   : > { %v1061_v28 = vadd.f32 %v926_v25, %v785_v6 }
 0x2da   : > { %1093 = vst [vmem:[#allocation7 + $0x50] sm:$0xff] %v1061_v28  ;;  %1025 = vmatmul.bf16.gmra.mxu3 %v1575_v7 }
 0x2dd   : > { %v881_v29 = vpop.f32.mrf.mxu2  ;;  %v928_v16 = vpop.f32.mrf.mxu3 }
 0x2de   : > { %v929_v24 = vadd.f32 %v928_v16, %v879_v21  ;;  %v782_v16 = vld [vmem:[#allocation7 + $0x38] sm:$0xff] }
 0x2e0   : > { %v1063_v31 = vadd.f32 %v929_v24, %v787_v10 }
 0x2e2   : > { %1095 = vst [vmem:[#allocation7 + $0x60] sm:$0xff] %v1063_v31  ;;  %981 = vmatmul.bf16.gmra.mxu2 %v2078_v44 }
 0x2e5   : > { %v884_v27 = vpop.f32.mrf.mxu2  ;;  %v930_v33 = vpop.f32.mrf.mxu3 }
 0x2e6   : > { %v931_v52 = vadd.f32 %v930_v33, %v881_v29  ;;  %v784_v33 = vld [vmem:[#allocation7 + $0x48] sm:$0xff] }
 0x2e8   : > { %v1065_v3 = vadd.f32 %v931_v52, %v789_v32 }
 0x2ea   : > { %1097 = vst [vmem:[#allocation7 + $0x70] sm:$0xff] %v1065_v3  ;;  %1030 = vmatmul.bf16.gmra.mxu3 %v2081_v36  ;;  %v797_v36 = vld [vmem:[#allocation7 + $0xb0] sm:$0xff] }
 0x2ed   : > { %v886_v38 = vpop.f32.mrf.mxu2  ;;  %v933_v53 = vpop.f32.mrf.mxu3 }
 0x2ee   : > { %v934_v37 = vadd.f32 %v933_v53, %v884_v27  ;;  %v786_v53 = vld [vmem:[#allocation7 + $0x58] sm:$0xff] }
 0x2f0   : > { %v1067_v34 = vadd.f32 %v934_v37, %v791_v47 }
 0x2f2   : > { %1099 = vst [vmem:[#allocation7 + $0x80] sm:$0xff] %v1067_v34  ;;  %986 = vmatmul.bf16.gmra.mxu2 %v2084_v18 }
 0x2f5   : > { %v889_v39 = vpop.f32.mrf.mxu2  ;;  %v935_v42 = vpop.f32.mrf.mxu3 }
 0x2f6   : > { %v936_v43 = vadd.f32 %v935_v42, %v886_v38  ;;  %v788_v42 = vld [vmem:[#allocation7 + $0x68] sm:$0xff] }
 0x2f8   : > { %v1069_v59 = vadd.f32 %v936_v43, %v793_v40 }
 0x2fa   : > { %1101 = vst [vmem:[#allocation7 + $0x90] sm:$0xff] %v1069_v59  ;;  %1035 = vmatmul.bf16.gmra.mxu3 %v2087_v19 }
 0x2fd   : > { %v891_v0 = vpop.f32.mrf.mxu2  ;;  %v938_v22 = vpop.f32.mrf.mxu3 }
 0x2fe   : > { %v939_v5 = vadd.f32 %v938_v22, %v889_v39  ;;  %v790_v22 = vld [vmem:[#allocation7 + $0x78] sm:$0xff] }
 0x300   : > { %v1071_v7 = vadd.f32 %v939_v5, %v795_v2 }
 0x302   : > { %1103 = vst [vmem:[#allocation7 + $0xa0] sm:$0xff] %v1071_v7  ;;  %991 = vmatmul.bf16.gmra.mxu2 %v2090_v11 }
 0x305   : > { %v894_v44 = vpop.f32.mrf.mxu2  ;;  %v940_v48 = vpop.f32.mrf.mxu3 }
 0x306   : > { %v941_v18 = vadd.f32 %v940_v48, %v891_v0  ;;  %v792_v48 = vld [vmem:[#allocation7 + $0x88] sm:$0xff] }
 0x308   : > { %v1073_v49 = vadd.f32 %v941_v18, %v797_v36 }
 0x30a   : > { %1105 = vst [vmem:[#allocation7 + $0xb0] sm:$0xff] %v1073_v49  ;;  %1040 = vmatmul.bf16.gmra.mxu3 %v2093_v15 }
 0x30d   : > { %v896_v54 = vpop.f32.mrf.mxu2  ;;  %v943_v57 = vpop.f32.mrf.mxu3 }
 0x30e   : > { %v944_v19 = vadd.f32 %v943_v57, %v894_v44  ;;  %v794_v57 = vld [vmem:[#allocation7 + $0x98] sm:$0xff] }
 0x310   : > { %v1075_v26 = vadd.f32 %v944_v19, %v799_v55 }
 0x312   : > { %1107 = vst [vmem:[#allocation7 + $0xc0] sm:$0xff] %v1075_v26  ;;  %996 = vmatmul.bf16.gmra.mxu2 %v2096_v20 }
 0x315   : > { %v899_v30 = vpop.f32.mrf.mxu2  ;;  %v945_v58 = vpop.f32.mrf.mxu3 }
 0x316   : > { %v946_v11 = vadd.f32 %v945_v58, %v896_v54  ;;  %v796_v58 = vld [vmem:[#allocation7 + $0xa8] sm:$0xff] }
 0x318   : > { %v1077_v61 = vadd.f32 %v946_v11, %v801_v35 }
 0x31a   : > { %1109 = vst [vmem:[#allocation7 + $0xd0] sm:$0xff] %v1077_v61  ;;  %1045 = vmatmul.bf16.gmra.mxu3 %v2099_v46  ;;  %v778_v46 = vld [vmem:[#allocation7 + $0x18] sm:$0xff] }
 0x31d   : > { %v901_v62 = vpop.f32.mrf.mxu2  ;;  %v948_v4 = vpop.f32.mrf.mxu3 }
 0x31e   : > { %v949_v15 = vadd.f32 %v948_v4, %v899_v30 }
 0x320   : > { %v1079_v8 = vadd.f32 %v949_v15, %v803_v63  ;;  %v798_v63 = vld [vmem:[#allocation7 + $0xb8] sm:$0xff] }
 0x322   : > { %1111 = vst [vmem:[#allocation7 + $0xe0] sm:$0xff] %v1079_v8 }
 0x325   : > { %v950_v45 = vpop.f32.mrf.mxu3  ;;  %v962_v50 = vpop.f32.mrf.mxu2 }
 0x326   : > { %v951_v9 = vadd.f32 %v950_v45, %v901_v62  ;;  %v800_v45 = vld [vmem:[#allocation7 + $0xc8] sm:$0xff] }
 0x328   : > { %v1081_v12 = vadd.f32 %v951_v9, %v805_v41 }
 0x32a   : > { %1113 = vst [vmem:[#allocation7 + $0xf0] sm:$0xff] %v1081_v12 }
 0x32d   : > { %v964_v20 = vpop.f32.mrf.mxu2  ;;  %v1011_v51 = vpop.f32.mrf.mxu3 }
 0x32e   : > { %v1012_v14 = vadd.f32 %v1011_v51, %v962_v50 }
 0x330   : > { %v1052_v17 = vadd.f32 %v1012_v14, %v776_v13  ;;  %v802_v13 = vld [vmem:[#allocation7 + $0xd8] sm:$0xff] }
 0x332   : > { %1084 = vst [vmem:[#allocation7 + $0x8] sm:$0xff] %v1052_v17 }
 0x335   : > { %v967_v56 = vpop.f32.mrf.mxu2  ;;  %v1013_v60 = vpop.f32.mrf.mxu3 }
 0x336   : > { %v1014_v1 = vadd.f32 %v1013_v60, %v964_v20 }
 0x338   : > { %v1054_v21 = vadd.f32 %v1014_v1, %v778_v46  ;;  %v804_v46 = vld [vmem:[#allocation7 + $0xe8] sm:$0xff] }
 0x33a   : > { %1086 = vst [vmem:[#allocation7 + $0x18] sm:$0xff] %v1054_v21 }
 0x33d   : > { %v969_v6 = vpop.f32.mrf.mxu2  ;;  %v1016_v25 = vpop.f32.mrf.mxu3 }
 0x33e   : > { %v1017_v28 = vadd.f32 %v1016_v25, %v967_v56 }
 0x340   : > { %v1056_v29 = vadd.f32 %v1017_v28, %v780_v23  ;;  %v806_v23 = vld [vmem:[#allocation7 + $0xf8] sm:$0xff] }
 0x342   : > { %1088 = vst [vmem:[#allocation7 + $0x28] sm:$0xff] %v1056_v29 }
 0x345   : > { %v972_v10 = vpop.f32.mrf.mxu2  ;;  %v1018_v24 = vpop.f32.mrf.mxu3 }
 0x346   : > { %v1019_v31 = vadd.f32 %v1018_v24, %v969_v6 }
 0x348   : > { %v1058_v27 = vadd.f32 %v1019_v31, %v782_v16 }
 0x34a   : > { %1090 = vst [vmem:[#allocation7 + $0x38] sm:$0xff] %v1058_v27 }
 0x34d   : > { %v974_v32 = vpop.f32.mrf.mxu2  ;;  %v1021_v52 = vpop.f32.mrf.mxu3 }
 0x34e   : > { %v1022_v3 = vadd.f32 %v1021_v52, %v972_v10 }
 0x350   : > { %v1060_v38 = vadd.f32 %v1022_v3, %v784_v33 }
 0x352   : > { %1092 = vst [vmem:[#allocation7 + $0x48] sm:$0xff] %v1060_v38 }
 0x355   : > { %v977_v47 = vpop.f32.mrf.mxu2  ;;  %v1023_v37 = vpop.f32.mrf.mxu3 }
 0x356   : > { %v1024_v34 = vadd.f32 %v1023_v37, %v974_v32 }
 0x358   : > { %v1062_v39 = vadd.f32 %v1024_v34, %v786_v53 }
 0x35a   : > { %1094 = vst [vmem:[#allocation7 + $0x58] sm:$0xff] %v1062_v39 }
 0x35d   : > { %v979_v40 = vpop.f32.mrf.mxu2  ;;  %v1026_v43 = vpop.f32.mrf.mxu3 }
 0x35e   : > { %v1027_v59 = vadd.f32 %v1026_v43, %v977_v47 }
 0x360   : > { %v1064_v0 = vadd.f32 %v1027_v59, %v788_v42 }
 0x362   : > { %1096 = vst [vmem:[#allocation7 + $0x68] sm:$0xff] %v1064_v0 }
 0x365   : > { %v982_v2 = vpop.f32.mrf.mxu2  ;;  %v1028_v5 = vpop.f32.mrf.mxu3 }
 0x366   : > { %v1029_v7 = vadd.f32 %v1028_v5, %v979_v40 }
 0x368   : > { %v1066_v44 = vadd.f32 %v1029_v7, %v790_v22 }
 0x36a   : > { %1098 = vst [vmem:[#allocation7 + $0x78] sm:$0xff] %v1066_v44 }
 0x36d   : > { %v984_v36 = vpop.f32.mrf.mxu2  ;;  %v1031_v18 = vpop.f32.mrf.mxu3 }
 0x36e   : > { %v1032_v49 = vadd.f32 %v1031_v18, %v982_v2 }
 0x370   : > { %v1068_v54 = vadd.f32 %v1032_v49, %v792_v48 }
 0x372   : > { %1100 = vst [vmem:[#allocation7 + $0x88] sm:$0xff] %v1068_v54 }
 0x375   : > { %v987_v55 = vpop.f32.mrf.mxu2  ;;  %v1033_v19 = vpop.f32.mrf.mxu3 }
 0x376   : > { %v1034_v26 = vadd.f32 %v1033_v19, %v984_v36 }
 0x378   : > { %v1070_v30 = vadd.f32 %v1034_v26, %v794_v57 }
 0x37a   : > { %1102 = vst [vmem:[#allocation7 + $0x98] sm:$0xff] %v1070_v30 }
 0x37d   : > { %v989_v35 = vpop.f32.mrf.mxu2  ;;  %v1036_v11 = vpop.f32.mrf.mxu3 }
 0x37e   : > { %v1037_v61 = vadd.f32 %v1036_v11, %v987_v55 }
 0x380   : > { %v1072_v62 = vadd.f32 %v1037_v61, %v796_v58 }
 0x382   : > { %1104 = vst [vmem:[#allocation7 + $0xa8] sm:$0xff] %v1072_v62 }
 0x385   : > { %v1038_v4 = vpop.f32.mrf.mxu3  ;;  %v992_v8 = vpop.f32.mrf.mxu2 }
 0x386   : > { %v1039_v15 = vadd.f32 %v1038_v4, %v989_v35 }
 0x388   : > { %v1074_v41 = vadd.f32 %v1039_v15, %v798_v63 }
 0x38a   : > { %1106 = vst [vmem:[#allocation7 + $0xb8] sm:$0xff] %v1074_v41 }
 0x38d   : > { %v1041_v50 = vpop.f32.mrf.mxu3  ;;  %v994_v20 = vpop.f32.mrf.mxu2 }
 0x38e   : > { %v1042_v9 = vadd.f32 %v1041_v50, %v992_v8 }
 0x390   : > { %v1076_v12 = vadd.f32 %v1042_v9, %v800_v45 }
 0x392   : > { %1108 = vst [vmem:[#allocation7 + $0xc8] sm:$0xff] %v1076_v12 }
 0x395   : > { %v1043_v51 = vpop.f32.mrf.mxu3  ;;  %v997_v56 = vpop.f32.mrf.mxu2 }
 0x396   : > { %v1044_v14 = vadd.f32 %v1043_v51, %v994_v20 }
 0x398   : > { %v1078_v17 = vadd.f32 %v1044_v14, %v802_v13 }
 0x39a   : > { %1110 = vst [vmem:[#allocation7 + $0xd8] sm:$0xff] %v1078_v17 }
 0x39d   : > { %v1046_v60 = vpop.f32.mrf.mxu3  ;;  %v999_v6 = vpop.f32.mrf.mxu2 }
 0x39e   : > { %v1047_v1 = vadd.f32 %v1046_v60, %v997_v56 }
 0x3a0   : > { %v1080_v21 = vadd.f32 %v1047_v1, %v804_v46 }
 0x3a2   : > { %1112 = vst [vmem:[#allocation7 + $0xe8] sm:$0xff] %v1080_v21 }
 0x3a5   : > { %v1048_v25 = vpop.f32.mrf.mxu3 }
 0x3a6   : > { %v1049_v28 = vadd.f32 %v1048_v25, %v999_v6 }
 0x3a8   : > { %v1082_v29 = vadd.f32 %v1049_v28, %v806_v23 }
 0x3aa   : > { %1114 = vst [vmem:[#allocation7 + $0xf8] sm:$0xff] %v1082_v29 }
 0x3ab   : > { %1487 = dma.vmem_to_hbm [thread:$0]  (%p1501_p1), %s1125_s24, 4096, %s1127_s7, [#allocation4], %s1740_s10, %s1740_s10, %s1741_s11  }
 0x3ac   : > { %1706 = dma.done.wait (%p1501_p1), [#allocation4], 4096  }
 0x3ad   : > { %1708 = vsyncadd (%p1501_p1), [#allocation4], 4294963200 }
 0x3ae PF: > { %s18_s17 = sadd.s32 1, %s1731_s17   ;;  %s2141_s12 = smov %s1715_s13 }
 0x3af   : > { %p15_p3 = scmp.ge.s32.totalorder %s18_s17, 4   ;;  %s2142_s13 = smov %s1719_s14 }
 0x3b0   : > { %s2143_s14 = smov %s1834_s9  ;;  %s2144_s15 = smov %s1727_s16 }
 0x3b1   : > { %s2145_s16 = smov %s2147_s29  ;;  %17 = sbr.rel (!%p15_p3) target bundleno = 6 (0x6), region = 82 }
 0x3b6   :  { %1143 = vsyncpa [#allocation3], 1 }
 0x3b7   :  { %1145 = vsyncpa [#allocation3 + $0x1], 1 }
 0x3b8   :  { %1146 = vsyncpa [#allocation6], 1 }
 0x3b9   :  { %1147 = vsyncpa [#allocation4], 1 }
 0x3ba   :  { %1149 = vsyncpa [#allocation4 + $0x1], 1 }

</bundles_post_ra>
